<compile_context>
chip_gen: v7x
topology: tpu7x:2x2x1
jax: 0.10.0
libtpu: 0.0.40
codegen_flags: <defaults>
</compile_context>

<pallas_src>
import math

import jax
import jax.numpy as jnp
from jax.experimental import pallas as pl
from jax.experimental.pallas import tpu as pltpu

SCALE_FACTOR = 30.0
TB_MAX = 1024            # batch (lane) tile cap; multiple of 128
SMALL_BATCH = 128        # below/equal this, plain XLA beats kernel launch cost


def _mlp_kernel(x_ref, w1_ref, b1_ref, w2_ref, b2_ref, w3_ref, b3_ref, o_ref):
    """One batch tile.  Shapes: x (n_dim, TB); w1 (32, n_dim); b1 (32, 1);
    w2 (16, 32); b2 (16, 1); w3 (8, 16, scale folded); b3 (1, 1, scale folded);
    out (1, TB)."""
    n_dim = x_ref.shape[0]
    x = x_ref[...]                                     # (n_dim, TB)
    w1 = w1_ref[...]                                   # (32, n_dim)

    # layer 1: tiny contraction dim -> VPU broadcast-MAC; `state` is already
    # folded into b1.
    acc = b1_ref[...] + w1[:, 0:1] * x[0:1, :]         # (32, TB)
    for k in range(1, n_dim):
        acc = acc + w1[:, k:k + 1] * x[k:k + 1, :]
    h1 = jnp.maximum(acc, 0.0)                         # (32, TB)

    # layer 2: (16, 32) @ (32, TB) on the MXU.
    h2 = jnp.dot(w2_ref[...], h1, preferred_element_type=jnp.float32) + b2_ref[...]
    h2 = jnp.maximum(h2, 0.0)                          # (16, TB)

    # layer 3: (8, 16) @ (16, TB); only row 0 is real, scale already folded in.
    y = jnp.dot(w3_ref[...], h2, preferred_element_type=jnp.float32)
    o_ref[...] = y[0:1, :] + b3_ref[...]               # (1, TB), lane-dense


def _round_up(v, m):
    return ((v + m - 1) // m) * m


def prepare_params(params):
    """One-time, state-independent weight prep: transposes + SCALE_FACTOR fold.
    Cache the result and reuse it across forward calls."""
    w1, b1, w2, b2, w3, b3 = params
    w1 = jnp.asarray(w1, jnp.float32)
    w1_state = w1[0, :]                                # (32,)  state row
    w1aT = w1[1:, :].T                                 # (32, n_dim) action rows
    b1f = jnp.asarray(b1, jnp.float32)                 # (32,)
    w2T = jnp.asarray(w2, jnp.float32).T               # (16, 32)
    b2_p = jnp.asarray(b2, jnp.float32)[:, None]       # (16, 1)
    # layer-3 weight padded to 8 output sublanes, scale folded in.
    w3T = jnp.asarray(w3, jnp.float32).T * SCALE_FACTOR          # (1, 16)
    w3T = jnp.pad(w3T, ((0, 7), (0, 0)))                          # (8, 16)
    b3_p = jnp.reshape(jnp.asarray(b3, jnp.float32), (1, 1)) * SCALE_FACTOR
    return (w1_state, w1aT, b1f, w2T, b2_p, w3T, b3_p)


def _jnp_forward(state, action, params):
    """Plain-XLA path for tiny batches / single actions (launch-cost bound)."""
    w1, b1, w2, b2, w3, b3 = params
    B = action.shape[0]
    state_f = jnp.asarray(state, jnp.float32)
    x = jnp.concatenate([jnp.full((B, 1), state_f, jnp.float32), action], axis=-1)
    h1 = jnp.maximum(x @ w1 + b1, 0.0)
    h2 = jnp.maximum(h1 @ w2 + b2, 0.0)
    return (h2 @ w3 + b3) * SCALE_FACTOR


def mlp_reward_forward(state, action, params, prepared=None):
    """state: scalar; action: [B, n_dim] (or [n_dim]) -> reward [B, 1] f32."""
    action = jnp.asarray(action, jnp.float32)
    if action.ndim == 1:                         # single-action path of forward()
        return _jnp_forward(state, action[None, :], params)[0]
    B, n_dim = action.shape
    if B <= SMALL_BATCH:
        return _jnp_forward(state, action, params)

    if prepared is None:
        prepared = prepare_params(params)
    w1_state, w1aT, b1f, w2T, b2_p, w3T, b3_p = prepared
    H1 = w1aT.shape[0]

    # Batch tile: multiple of 128 lanes, >=2 grid steps when B > 128 so v7x's
    # two TensorCores both get work; capped by TB_MAX (vreg pressure is mild
    # now that hidden dims are unpadded, VMEM is ~100s of KiB everywhere).
    TB = max(128, min(TB_MAX, _round_up((B + 1) // 2, 128)))
    Bp = _round_up(B, TB)

    state_f = jnp.asarray(state, jnp.float32)
    # Per-call work: fold scalar state into layer-1 bias; transpose action so
    # batch lands on the lane axis (lane-dense HBM input).
    b1_eff = (b1f + state_f * w1_state)[:, None]                  # (H1, 1)
    xT = jnp.pad(action.T, ((0, 0), (0, Bp - B)))                 # (n_dim, Bp)

    const = lambda i: (0, 0)
    out_row = pl.pallas_call(
        _mlp_kernel,
        out_shape=jax.ShapeDtypeStruct((1, Bp), jnp.float32),
        grid_spec=pltpu.PrefetchScalarGridSpec(
            num_scalar_prefetch=0,
            grid=(Bp // TB,),
            in_specs=[
                pl.BlockSpec((n_dim, TB), lambda i: (0, i)),   # action^T tile
                pl.BlockSpec((H1, n_dim), const),              # layer-1 weight^T
                pl.BlockSpec((H1, 1), const),                  # layer-1 bias (+state)
                pl.BlockSpec(w2T.shape, const),                # layer-2 weight^T
                pl.BlockSpec(b2_p.shape, const),               # layer-2 bias
                pl.BlockSpec(w3T.shape, const),                # layer-3 weight^T (scaled)
                pl.BlockSpec((1, 1), const),                   # layer-3 bias (scaled)
            ],
            out_specs=pl.BlockSpec((1, TB), lambda i: (0, i)),  # lane-dense rewards
        ),
        compiler_params=pltpu.CompilerParams(
            dimension_semantics=("parallel",),
            allow_input_fusion=[0]),
    )(xT, w1aT, b1_eff, w2T, b2_p, w3T, b3_p)

    # Padded lanes (B..Bp) hold ReLU(b1_eff)-propagated garbage; slice them off.
    return out_row[0, :B].reshape(B, 1)


def init_params(n_dimension, seed=0):
    """Deterministic init mirroring the PyTorch scheme (xavier-normal hidden
    layers, uniform(0, 0.1) output layer).  Weights stored as [in, out]."""
    key = jax.random.PRNGKey(seed)
    k1, k2, k3, k4, k5 = jax.random.split(key, 5)
    d_in, h1, h2 = 1 + n_dimension, 32, 16

    std1 = math.sqrt(2.0 / (d_in + h1))
    w1 = std1 * jax.random.normal(k1, (d_in, h1), jnp.float32)
    bnd1 = 1.0 / math.sqrt(d_in)
    b1 = jax.random.uniform(k2, (h1,), jnp.float32, -bnd1, bnd1)

    std2 = math.sqrt(2.0 / (h1 + h2))
    w2 = std2 * jax.random.normal(k3, (h1, h2), jnp.float32)
    bnd2 = 1.0 / math.sqrt(h1)
    b2 = jax.random.uniform(k4, (h2,), jnp.float32, -bnd2, bnd2)

    w3 = jax.random.uniform(k5, (h2, 1), jnp.float32, 0.0, 0.1)
    b3 = jnp.array([0.15], jnp.float32)  # np_rng.random() * 0.3 stand-in
    return (w1, b1, w2, b2, w3, b3)


def _reference_forward(state, action, params):
    """Pure-JAX reference of the same MLP path, for correctness check."""
    w1, b1, w2, b2, w3, b3 = params
    B = action.shape[0]
    state_f = jnp.asarray(state, jnp.float32)
    x = jnp.concatenate([jnp.full((B, 1), state_f), action], axis=-1)
    h1 = jnp.maximum(x @ w1 + b1, 0.0)
    h2 = jnp.maximum(h1 @ w2 + b2, 0.0)
    return (h2 @ w3 + b3) * SCALE_FACTOR


if __name__ == "__main__":
    n_dimension = 4
    params = init_params(n_dimension, seed=0)
    prepared = prepare_params(params)        # hoisted, reused across calls
    state = 0.5                              # scalar state, matches torch usage

    key = jax.random.PRNGKey(0)
    k_small, k_mid, k_big = jax.random.split(key, 3)
    # batch=8: pure-jnp fallback path; batch=300: Pallas kernel, 2 grid steps
    # with lane-pad tail; batch=777: Pallas kernel, different TB.
    for batch, k in ((8, k_small), (300, k_mid), (777, k_big)):
        action = jax.random.uniform(k, (batch, n_dimension), jnp.float32)
        out = jax.block_until_ready(
            mlp_reward_forward(state, action, params, prepared=prepared))
        ref = _reference_forward(state, action, params)
        assert out.shape == (batch, 1), out.shape
        err = float(jnp.max(jnp.abs(out - ref)))
        assert jnp.allclose(out, ref, atol=5e-4, rtol=5e-4), (batch, err)
    print("KERNEL_OK")
</pallas_src>

<mosaic_0001>
module attributes {stable_mosaic.version = 11 : i64} {
  func.func @_mlp_kernel(%arg0: i32, %arg1: memref<4x256xf32, #tpu.memory_space<vmem>>, %arg2: memref<32x4xf32, #tpu.memory_space<vmem>>, %arg3: memref<32x1xf32, #tpu.memory_space<vmem>>, %arg4: memref<16x32xf32, #tpu.memory_space<vmem>>, %arg5: memref<16x1xf32, #tpu.memory_space<vmem>>, %arg6: memref<8x16xf32, #tpu.memory_space<vmem>>, %arg7: memref<1x1xf32, #tpu.memory_space<vmem>>, %arg8: memref<1x256xf32, #tpu.memory_space<vmem>>) attributes {dimension_semantics = [#tpu.dimension_semantics<parallel>], iteration_bounds = array<i64: 2>, scalar_prefetch = 0 : i64, scratch_operands = 0 : i64, tpu.core_type = #tpu.core_type<tc>, window_params = [{transform_indices = @transform_0, window_bounds = array<i64: 4, 256>}, {pipeline_mode = #tpu.pipeline_mode<synchronous>, transform_indices = @transform_1, window_bounds = array<i64: 32, 4>}, {pipeline_mode = #tpu.pipeline_mode<synchronous>, transform_indices = @transform_2, window_bounds = array<i64: 32, 1>}, {pipeline_mode = #tpu.pipeline_mode<synchronous>, transform_indices = @transform_3, window_bounds = array<i64: 16, 32>}, {pipeline_mode = #tpu.pipeline_mode<synchronous>, transform_indices = @transform_4, window_bounds = array<i64: 16, 1>}, {pipeline_mode = #tpu.pipeline_mode<synchronous>, transform_indices = @transform_5, window_bounds = array<i64: 8, 16>}, {pipeline_mode = #tpu.pipeline_mode<synchronous>, transform_indices = @transform_6, window_bounds = array<i64: 1, 1>}, {transform_indices = @transform_7, window_bounds = array<i64: 1, 256>}]} {
    %c0 = arith.constant 0 : index
    %c0_0 = arith.constant 0 : index
    %0 = vector.load %arg1[%c0, %c0_0] : memref<4x256xf32, #tpu.memory_space<vmem>>, vector<4x256xf32>
    %c0_1 = arith.constant 0 : index
    %c0_2 = arith.constant 0 : index
    %1 = vector.load %arg2[%c0_1, %c0_2] : memref<32x4xf32, #tpu.memory_space<vmem>>, vector<32x4xf32>
    %c0_3 = arith.constant 0 : index
    %c0_4 = arith.constant 0 : index
    %2 = vector.load %arg3[%c0_3, %c0_4] : memref<32x1xf32, #tpu.memory_space<vmem>>, vector<32x1xf32>
    %3 = vector.extract_strided_slice %1 {offsets = [0, 0], sizes = [32, 1], strides = [1, 1]} : vector<32x4xf32> to vector<32x1xf32>
    %4 = vector.extract_strided_slice %0 {offsets = [0, 0], sizes = [1, 256], strides = [1, 1]} : vector<4x256xf32> to vector<1x256xf32>
    %5 = vector.broadcast %3 : vector<32x1xf32> to vector<32x256xf32>
    %6 = vector.broadcast %4 : vector<1x256xf32> to vector<32x256xf32>
    %7 = arith.mulf %5, %6 : vector<32x256xf32>
    %8 = vector.broadcast %2 : vector<32x1xf32> to vector<32x256xf32>
    %9 = arith.addf %8, %7 : vector<32x256xf32>
    %10 = vector.extract_strided_slice %1 {offsets = [0, 1], sizes = [32, 1], strides = [1, 1]} : vector<32x4xf32> to vector<32x1xf32>
    %11 = vector.extract_strided_slice %0 {offsets = [1, 0], sizes = [1, 256], strides = [1, 1]} : vector<4x256xf32> to vector<1x256xf32>
    %12 = vector.broadcast %10 : vector<32x1xf32> to vector<32x256xf32>
    %13 = vector.broadcast %11 : vector<1x256xf32> to vector<32x256xf32>
    %14 = arith.mulf %12, %13 : vector<32x256xf32>
    %15 = arith.addf %9, %14 : vector<32x256xf32>
    %16 = vector.extract_strided_slice %1 {offsets = [0, 2], sizes = [32, 1], strides = [1, 1]} : vector<32x4xf32> to vector<32x1xf32>
    %17 = vector.extract_strided_slice %0 {offsets = [2, 0], sizes = [1, 256], strides = [1, 1]} : vector<4x256xf32> to vector<1x256xf32>
    %18 = vector.broadcast %16 : vector<32x1xf32> to vector<32x256xf32>
    %19 = vector.broadcast %17 : vector<1x256xf32> to vector<32x256xf32>
    %20 = arith.mulf %18, %19 : vector<32x256xf32>
    %21 = arith.addf %15, %20 : vector<32x256xf32>
    %22 = vector.extract_strided_slice %1 {offsets = [0, 3], sizes = [32, 1], strides = [1, 1]} : vector<32x4xf32> to vector<32x1xf32>
    %23 = vector.extract_strided_slice %0 {offsets = [3, 0], sizes = [1, 256], strides = [1, 1]} : vector<4x256xf32> to vector<1x256xf32>
    %24 = vector.broadcast %22 : vector<32x1xf32> to vector<32x256xf32>
    %25 = vector.broadcast %23 : vector<1x256xf32> to vector<32x256xf32>
    %26 = arith.mulf %24, %25 : vector<32x256xf32>
    %27 = arith.addf %21, %26 : vector<32x256xf32>
    %cst = arith.constant 0.000000e+00 : f32
    %28 = vector.broadcast %cst : f32 to vector<32x256xf32>
    %29 = arith.maximumf %27, %28 : vector<32x256xf32>
    %c0_5 = arith.constant 0 : index
    %c0_6 = arith.constant 0 : index
    %30 = vector.load %arg4[%c0_5, %c0_6] : memref<16x32xf32, #tpu.memory_space<vmem>>, vector<16x32xf32>
    %cst_7 = arith.constant dense<0.000000e+00> : vector<16x256xf32>
    %31 = tpu.matmul %30, %29, %cst_7 {dimension_numbers = #tpu.dot_dimension_numbers<[1], [0], [0], [1], [0, 0, 1, 1], [], []>} : vector<16x32xf32>, vector<32x256xf32>, vector<16x256xf32> -> vector<16x256xf32>
    %c0_8 = arith.constant 0 : index
    %c0_9 = arith.constant 0 : index
    %32 = vector.load %arg5[%c0_8, %c0_9] : memref<16x1xf32, #tpu.memory_space<vmem>>, vector<16x1xf32>
    %33 = vector.broadcast %32 : vector<16x1xf32> to vector<16x256xf32>
    %34 = arith.addf %31, %33 : vector<16x256xf32>
    %cst_10 = arith.constant 0.000000e+00 : f32
    %35 = vector.broadcast %cst_10 : f32 to vector<16x256xf32>
    %36 = arith.maximumf %34, %35 : vector<16x256xf32>
    %c0_11 = arith.constant 0 : index
    %c0_12 = arith.constant 0 : index
    %37 = vector.load %arg6[%c0_11, %c0_12] : memref<8x16xf32, #tpu.memory_space<vmem>>, vector<8x16xf32>
    %cst_13 = arith.constant dense<0.000000e+00> : vector<8x256xf32>
    %38 = tpu.matmul %37, %36, %cst_13 {dimension_numbers = #tpu.dot_dimension_numbers<[1], [0], [0], [1], [0, 0, 1, 1], [], []>} : vector<8x16xf32>, vector<16x256xf32>, vector<8x256xf32> -> vector<8x256xf32>
    %39 = vector.extract_strided_slice %38 {offsets = [0, 0], sizes = [1, 256], strides = [1, 1]} : vector<8x256xf32> to vector<1x256xf32>
    %c0_14 = arith.constant 0 : index
    %c0_15 = arith.constant 0 : index
    %40 = vector.load %arg7[%c0_14, %c0_15] : memref<1x1xf32, #tpu.memory_space<vmem>>, vector<1x1xf32>
    %41 = vector.broadcast %40 : vector<1x1xf32> to vector<1x256xf32>
    %42 = arith.addf %39, %41 : vector<1x256xf32>
    %c0_16 = arith.constant 0 : index
    %c0_17 = arith.constant 0 : index
    %43 = vector.load %arg8[%c0_16, %c0_17] : memref<1x256xf32, #tpu.memory_space<vmem>>, vector<1x256xf32>
    tpu.vector_store %arg8[%c0_16, %c0_17], %42 {strides = array<i32>} : memref<1x256xf32, #tpu.memory_space<vmem>>, vector<1x256xf32>,
    return
  }
  func.func @transform_0(%arg0: i32) -> (i32, i32) {
    %c0_i32 = arith.constant 0 : i32
    %c0_i32_0 = arith.constant 0 : i32
    return %c0_i32, %arg0 : i32, i32
  }
  func.func @transform_1(%arg0: i32) -> (i32, i32) {
    %c0_i32 = arith.constant 0 : i32
    %c0_i32_0 = arith.constant 0 : i32
    %c0_i32_1 = arith.constant 0 : i32
    return %c0_i32, %c0_i32_0 : i32, i32
  }
  func.func @transform_2(%arg0: i32) -> (i32, i32) {
    %c0_i32 = arith.constant 0 : i32
    %c0_i32_0 = arith.constant 0 : i32
    %c0_i32_1 = arith.constant 0 : i32
    return %c0_i32, %c0_i32_0 : i32, i32
  }
  func.func @transform_3(%arg0: i32) -> (i32, i32) {
    %c0_i32 = arith.constant 0 : i32
    %c0_i32_0 = arith.constant 0 : i32
    %c0_i32_1 = arith.constant 0 : i32
    return %c0_i32, %c0_i32_0 : i32, i32
  }
  func.func @transform_4(%arg0: i32) -> (i32, i32) {
    %c0_i32 = arith.constant 0 : i32
    %c0_i32_0 = arith.constant 0 : i32
    %c0_i32_1 = arith.constant 0 : i32
    return %c0_i32, %c0_i32_0 : i32, i32
  }
  func.func @transform_5(%arg0: i32) -> (i32, i32) {
    %c0_i32 = arith.constant 0 : i32
    %c0_i32_0 = arith.constant 0 : i32
    %c0_i32_1 = arith.constant 0 : i32
    return %c0_i32, %c0_i32_0 : i32, i32
  }
  func.func @transform_6(%arg0: i32) -> (i32, i32) {
    %c0_i32 = arith.constant 0 : i32
    %c0_i32_0 = arith.constant 0 : i32
    %c0_i32_1 = arith.constant 0 : i32
    return %c0_i32, %c0_i32_0 : i32, i32
  }
  func.func @transform_7(%arg0: i32) -> (i32, i32) {
    %c0_i32 = arith.constant 0 : i32
    %c0_i32_0 = arith.constant 0 : i32
    return %c0_i32, %arg0 : i32, i32
  }
}

</mosaic_0001>

<bundles_post_ra>
// kernel: tpu_custom_call.1
= control target key start
LH: loop header
LB: loop body
LE: loop exit
PB: predicated region body
PF: predicated region fallthrough
CT: control target
= control target key end

     0   :  { %s1236_s0 = inlined_call_operand.vmem [shape: f32[4,512], index: 0, kind: input, shape index: {}]   ;;  %s1237_s1 = inlined_call_operand.vmem [shape: f32[32,4], index: 1, kind: input, shape index: {}]   ;;  %s1238_s2 = inlined_call_operand.vmem [shape: f32[32,1], index: 2, kind: input, shape index: {}]   ;;  %s1239_s3 = inlined_call_operand.vmem [shape: f32[16,32], index: 3, kind: input, shape index: {}]   ;;  %s1240_s4 = inlined_call_operand.vmem [shape: f32[16,1], index: 4, kind: input, shape index: {}]   ;;  %s1241_s5 = inlined_call_operand.vmem [shape: f32[8,16], index: 5, kind: input, shape index: {}]   ;;  %s1242_s6 = inlined_call_operand.<no memory space> [shape: f32[1,1], index: 6, kind: input, shape index: {}]   ;;  %s1243_s7 = inlined_call_operand.hbm [shape: f32[1,512], index: 7, kind: output, shape index: {}]  }
   0x1   :  { %v12_v0 = vstv %s1242_s6 }
   0x2   :  { %13 = vst [vmem:[#allocation2] sm:$0x1] %v12_v0 }
   0x3   :  { %14 = vsyncpa [#allocation4], 0 }
   0x4   :  { %16 = vsyncpa [#allocation4 + $0x1], 0  ;;  %s1012_s26 = smov 0   ;;  %s1014_s27 = smov 0  }
   0x5   :  { %s1016_s28 = smov 0   ;;  %s1018_s29 = smov 0  }
   0x6 LB: > { %s1033_s6 = sadd.s32 4294967295, %s960_s29   ;;  %s811_s30 = sadd.s32 4294967294, %s960_s29   ;;  %s960_s29 = sphi %s1018_s29, %s1249_s29   ;;  %s956_s28 = sphi %s1016_s28, %s1248_s28   ;;  %s952_s27 = sphi %s1014_s27, %s1247_s27   ;;  %s948_s26 = sphi %s1012_s26, %s1246_s26  }
   0x7   : > { %s1037_s8 = sadd.s32 1, %s960_s29   ;;  %s181_s9 = sadd.s32 1, %s956_s28 }
   0x8   : > { %s178_s10 = ssub.s32 %s960_s29, %s1037_s8  ;;  %p191_p0 = scmp.ne.s32.totalorder %s956_s28, %s952_s27 }
   0x9   : > { %p179_p1 = scmp.eq.s32.totalorder %s178_s10, 0  ;;  %p192_p2 = scmp.eq.s32.totalorder %s1033_s6, 1 }
   0xa   : > { %p197_p3 = scmp.ne.s32.totalorder %s952_s27, %s948_s26  ;;  %p198_p4 = scmp.eq.s32.totalorder %s811_s30, 1 }
   0xb   : > { %s1048_s11 = scalar_select %p179_p1, %s956_s28, %s181_s9  }
   0xc   : > { %p1050_p5 = por %p192_p2, %p191_p0  ;;  %p1054_p6 = por %p198_p4, %p197_p3 }
   0xd   : > { %p814_p7 = scmp.ge.s32.totalorder %s960_s29, 1  ;;  %p243_p8 = scmp.lt.s32.totalorder %s960_s29, 3 }
   0xf   : > { %p244_p9 = pnand %p814_p7, %p243_p8 }
  0x10   : > { %v287_v1 = vld [vmem:[%s1238_s2] sm:$0xff] (!%p244_p9)  ;;  %v962_v3 = vmov (!%p244_p9), 0   ;;  %v288_v4 = vld [vmem:[%s1238_s2 + $0x8] sm:$0xff] (!%p244_p9)  ;;  %v286_v6 = vld [vmem:[%s1237_s1 + $0x18] sm:$0xff] (!%p244_p9)  ;;  %v963_v7 = vmov (!%p244_p9), 1   ;;  %v964_v10 = vmov (!%p244_p9), 2   ;;  %v312_v21 = vlaneseq (!%p244_p9) }
  0x11   : > { %247 = sbr.rel (%p244_p9) target bundleno = 672 (0x2a0), region = 48  ;;  %v283_v2 = vld [vmem:[%s1237_s1] sm:$0xff] (!%p244_p9)  ;;  %885 = vset.pattern.permute.xlu1 (!%p244_p9), %v962_v3  ;;  %884 = vset.pattern.permute.xlu0 (!%p244_p9), %v962_v3  ;;  %v284_v5 = vld [vmem:[%s1237_s1 + $0x8] sm:$0xff] (!%p244_p9)  ;;  %v289_v8 = vld [vmem:[%s1238_s2 + $0x10] sm:$0xff] (!%p244_p9)  ;;  %v965_v11 = vmov (!%p244_p9), 3   ;;  %v966_v13 = vmov (!%p244_p9), 0.0  }
  0x12   : > { %340 = vperm.xlu1 (!%p244_p9), %885, %v287_v1   ;;  %293 = vperm.xlu0 (!%p244_p9), %884, %v283_v2   ;;  %v285_v9 = vld [vmem:[%s1237_s1 + $0x10] sm:$0xff] (!%p244_p9)  ;;  %v290_v12 = vld [vmem:[%s1238_s2 + $0x18] sm:$0xff] (!%p244_p9)  ;;  %v526_v14 = vld [vmem:[%s1240_s4] sm:$0xff] (!%p244_p9)  ;;  %s816_s19 = sshll.u32 (!%p244_p9), %s1033_s6, 1  ;;  %v1096_v24 = vshrl.u32 (!%p244_p9), %v312_v21, 7  ;;  %vm538_vm0 = vcmask (!%p244_p9), 261120  }
  0x13   : > { %609 = vmatprep.mubr.f32.mxu0 (!%p244_p9), %v966_v13  ;;  %695 = vmatprep.mubr.f32.mxu1 (!%p244_p9), %v966_v13  ;;  %v527_v15 = vld [vmem:[%s1240_s4 + $0x8] sm:$0xff] (!%p244_p9)  ;;  %v702_v16 = vld [vmem:[#allocation2] sm:$0x1] (!%p244_p9)  ;;  %p276_p10 = scmp.lt.s32.totalorder (!%p244_p9), %s816_s19, 3  ;;  %vm627_vm1 = vcmask (!%p244_p9), 130048   ;;  %s272_s15 = sand.u32 (!%p244_p9), 1, %s952_s27  }
  0x14   : > { %v1106_v27 = vsub.s32 (!%p244_p9), 0, %v1096_v24  ;;  %v318_v28 = vsub.s32 (!%p244_p9), 4, %v1096_v24  ;;  %v384_v30 = vsub.s32 (!%p244_p9), 1, %v1096_v24  ;;  %v388_v31 = vsub.s32 (!%p244_p9), 5, %v1096_v24  ;;  %s815_s16 = sshll.u32 (!%p244_p9), %s272_s15, 1  ;;  %s826_s17 = sshll.u32 (!%p244_p9), %s1033_s6, 5 }
  0x15   : > { %v434_v38 = vsub.s32 (!%p244_p9), 2, %v1096_v24  ;;  %v438_v39 = vsub.s32 (!%p244_p9), 6, %v1096_v24  ;;  %v484_v40 = vsub.s32 (!%p244_p9), 3, %v1096_v24  ;;  %v488_v41 = vsub.s32 (!%p244_p9), 7, %v1096_v24  ;;  %s274_s18 = scalar_lea.vmem (!%p244_p9), [#allocation3], %s815_s16  ;;  %s1194_s22 = scalar_lea.hbm (!%p244_p9), %s1243_s7, %s826_s17 }
  0x16   : > { %345 = vperm.xlu1 (!%p244_p9), %885, %v288_v4   ;;  %298 = vperm.xlu0 (!%p244_p9), %884, %v284_v5   ;;  %vm734_vm2 = vcmp.lt.s32.totalorder (!%p244_p9), %v312_v21, 256  ;;  %s968_s6 = smov (!%p244_p9), [#allocation3]  }
  0x17   : > { %s902_s25 = sshll.u32 (!%p244_p9), %s968_s6, 4  ;;  %s903_s25 = int_to_ptr.vmem [resolvable:$false] %s902_s25 }
  0x18   : > { %s1251_s19 = smov (!%p276_p10, %s816_s19), 3  ;;  %s904_s30 = scalar_lea.vmem %s903_s25, 64 }
  0x19   : > { %s817_s20 = sshll.u32 %s1251_s19, 2  ;;  %s752_s19 = sshll.u32 %s274_s18, 4  ;;  %s1196_s19 = int_to_ptr.vmem [resolvable:$true] %s752_s19 }
  0x1a   : > { %886 = vset.pattern.permute.xlu1 %v963_v7  ;;  %308 = vperm.xlu0 %884, %v286_v6   ;;  %s279_s23 = scalar_lea.vmem %s1236_s0, %s817_s20  ;;  %s898_s24 = scalar_lea.vmem %s1196_s19, 32 }
  0x1b   : > { %371 = vperm.xlu1 %886, %v284_v5   ;;  %v282_v29 = vld [vmem:[%s279_s23] sm:$0xff]  ;;  %s738_s23 = scalar_lea.sflag [#allocation4], %s272_s15  ;;  %p899_p11 = scmp.ne.s32.totalorder %s1196_s19, %s898_s24 }
  0x1c   : > { %v315_v33 = vrot.slane %v282_v29, %v1106_v27  ;;  %v319_v34 = vrot.slane %v282_v29, %v318_v28  ;;  %v385_v36 = vrot.slane %v282_v29, %v384_v30  ;;  %v389_v37 = vrot.slane %v282_v29, %v388_v31  ;;  %p905_p0 = scmp.lt.s32.totalorder %s1196_s19, %s903_s25  ;;  %p906_p1 = scmp.lt.s32.totalorder %s904_s30, %s898_s24 }
  0x1d   : > { %v435_v47 = vrot.slane %v282_v29, %v434_v38  ;;  %v439_v48 = vrot.slane %v282_v29, %v438_v39  ;;  %v485_v50 = vrot.slane %v282_v29, %v484_v40  ;;  %v489_v51 = vrot.slane %v282_v29, %v488_v41  ;;  %p900_p12 = pnand %p899_p11, %p1050_p5 }
  0x1e   : > { %350 = vperm.xlu0 %884, %v289_v8   ;;  %v1117_v43 = vrot.slane %v315_v33, %v1106_v27  ;;  %v1120_v44 = vrot.slane %v319_v34, %v1106_v27  ;;  %v1122_v45 = vrot.slane %v385_v36, %v384_v30  ;;  %v1124_v46 = vrot.slane %v389_v37, %v384_v30  ;;  %p907_p2 = por %p906_p1, %p905_p0 }
  0x1f   : > { %887 = vset.pattern.permute.xlu1 %v962_v3  ;;  %v1134_v59 = vrot.slane %v435_v47, %v434_v38  ;;  %v1136_v60 = vrot.slane %v439_v48, %v434_v38  ;;  %v1140_v63 = vrot.slane %v485_v50, %v484_v40  ;;  %v1142_v0 = vrot.slane %v489_v51, %v484_v40  ;;  %p901_p13 = pneg %p900_p12 }
  0x20   : > { %303 = vperm.xlu1 %887, %v285_v9  }
  0x21   : > { %p908_p3 = pnand %p907_p2, %p901_p13 }
  0x22   : > { %889 = vset.pattern.permute.xlu0 %v963_v7 }
  0x23   : > { %367 = vperm.xlu0 %889, %v283_v2  }
  0x24   : > { %888 = vset.pattern.permute.xlu1 %v964_v10 }
  0x25   : > { %417 = vperm.xlu1 %888, %v283_v2  }
  0x27   : > { %375 = vperm.xlu0 %889, %v285_v9  }
  0x29   : > { %421 = vperm.xlu1 %888, %v284_v5  }
  0x2b   : > { %893 = vset.pattern.permute.xlu0 %v965_v11 }
  0x2c   : > { %471 = vperm.xlu0 %893, %v284_v5  }
  0x2d   : > { %890 = vset.pattern.permute.xlu1 %v962_v3 }
  0x2e   : > { %355 = vperm.xlu1 %890, %v290_v12  }
  0x30   : > { %475 = vperm.xlu0 %893, %v285_v9  }
  0x32   : > { %891 = vset.pattern.permute.xlu1 %v963_v7 }
  0x33   : > { %379 = vperm.xlu1 %891, %v286_v6  }
  0x34   : > { %896 = vset.pattern.permute.xlu0 %v962_v3 }
  0x35   : > { %530 = vperm.xlu0 %896, %v526_v14  }
  0x37   : > { %892 = vset.pattern.permute.xlu1 %v965_v11 }
  0x38   : > { %467 = vperm.xlu1 %892, %v283_v2  }
  0x3c   : > { %894 = vset.pattern.permute.xlu1 %v964_v10 }
  0x3d   : > { %425 = vperm.xlu1 %894, %v285_v9  }
  0x41   : > { %429 = vperm.xlu1 %894, %v286_v6  }
  0x45   : > { %895 = vset.pattern.permute.xlu1 %v965_v11 }
  0x46   : > { %479 = vperm.xlu1 %895, %v286_v6  }
  0x4a   : > { %897 = vset.pattern.permute.xlu1 %v962_v3 }
  0x4b   : > { %535 = vperm.xlu1 %897, %v527_v15  }
  0x4f   : > { %705 = vperm.xlu1 %897, %v702_v16  }
  0x91   : > { %v341_v17 = vpop.permute.xlu1 %340  ;;  %v294_v18 = vpop.permute.xlu0 %293 }
  0x92   : > { %v330_v54 = vmul.f32 %v1117_v43, %v294_v18  ;;  %v331_v55 = vmul.f32 %v1120_v44, %v294_v18 }
  0x94   : > { %v358_v5 = vadd.f32 %v341_v17, %v330_v54  ;;  %v359_v6 = vadd.f32 %v341_v17, %v331_v55 }
  0x95   : > { %v346_v19 = vpop.permute.xlu1 %345  ;;  %v299_v20 = vpop.permute.xlu0 %298 }
  0x96   : > { %v332_v52 = vmul.f32 %v1117_v43, %v299_v20  ;;  %v333_v53 = vmul.f32 %v1120_v44, %v299_v20 }
  0x98   : > { %v360_v1 = vadd.f32 %v346_v19, %v332_v52  ;;  %v361_v2 = vadd.f32 %v346_v19, %v333_v53 }
  0x99   : > { %v1093_v22 = vpop.permute.xlu0 %308 }
  0x9a   : > { %v372_v23 = vpop.permute.xlu1 %371 }
  0x9b   : > { %v402_v57 = vmul.f32 %v1122_v45, %v372_v23  ;;  %v403_v58 = vmul.f32 %v1124_v46, %v372_v23 }
  0x9d   : > { %v1101_v25 = vpop.permute.xlu0 %350  ;;  %v410_v8 = vadd.f32 %v402_v57, %v360_v1  ;;  %v411_v9 = vadd.f32 %v403_v58, %v361_v2  ;;  %v337_v58 = vmul.f32 %v1120_v44, %v1093_v22 }
  0x9f   : > { %v1103_v26 = vpop.permute.xlu1 %303 }
  0xa0   : > { %v334_v34 = vmul.f32 %v1117_v43, %v1103_v26 }
  0xa2   : > { %v368_v35 = vpop.permute.xlu0 %367  ;;  %v362_v48 = vadd.f32 %v1101_v25, %v334_v34 }
  0xa3   : > { %v400_v61 = vmul.f32 %v1122_v45, %v368_v35  ;;  %v401_v62 = vmul.f32 %v1124_v46, %v368_v35 }
  0xa4   : > { %v418_v32 = vpop.permute.xlu1 %417 }
  0xa5   : > { %v408_v11 = vadd.f32 %v400_v61, %v358_v5  ;;  %v409_v12 = vadd.f32 %v401_v62, %v359_v6  ;;  %v450_v14 = vmul.f32 %v1134_v59, %v418_v32  ;;  %v451_v15 = vmul.f32 %v1136_v60, %v418_v32 }
  0xa6   : > { %v376_v49 = vpop.permute.xlu0 %375  ;;  %v335_v32 = vmul.f32 %v1120_v44, %v1103_v26 }
  0xa7   : > { %v458_v23 = vadd.f32 %v450_v14, %v408_v11  ;;  %v459_v28 = vadd.f32 %v451_v15, %v409_v12  ;;  %v404_v37 = vmul.f32 %v1122_v45, %v376_v49  ;;  %v405_v38 = vmul.f32 %v1124_v46, %v376_v49 }
  0xa8   : > { %v422_v42 = vpop.permute.xlu1 %421  ;;  %v363_v50 = vadd.f32 %v1101_v25, %v335_v32  ;;  %v336_v49 = vmul.f32 %v1117_v43, %v1093_v22 }
  0xa9   : > { %v452_v3 = vmul.f32 %v1134_v59, %v422_v42  ;;  %v453_v4 = vmul.f32 %v1136_v60, %v422_v42  ;;  %v412_v55 = vadd.f32 %v404_v37, %v362_v48 }
  0xaa   : > { %v413_v57 = vadd.f32 %v405_v38, %v363_v50 }
  0xab   : > { %v472_v7 = vpop.permute.xlu0 %471  ;;  %v460_v16 = vadd.f32 %v452_v3, %v410_v8  ;;  %v461_v18 = vadd.f32 %v453_v4, %v411_v9 }
  0xac   : > { %v502_v19 = vmul.f32 %v1140_v63, %v472_v7  ;;  %v503_v20 = vmul.f32 %v1142_v0, %v472_v7 }
  0xad   : > { %v1130_v56 = vpop.permute.xlu1 %355 }
  0xae   : > { %v510_v17 = vadd.f32 %v502_v19, %v460_v16  ;;  %v511_v33 = vadd.f32 %v503_v20, %v461_v18  ;;  %v364_v5 = vadd.f32 %v1130_v56, %v336_v49  ;;  %v365_v43 = vadd.f32 %v1130_v56, %v337_v58 }
  0xaf   : > { %v476_v26 = vpop.permute.xlu0 %475 }
  0xb0   : > { %v519_v41 = vmax.f32 %v511_v33, 0.0  ;;  %v518_v47 = vmax.f32 %v510_v17, 0.0  ;;  %v504_v3 = vmul.f32 %v1140_v63, %v476_v26  ;;  %v505_v4 = vmul.f32 %v1142_v0, %v476_v26 }
  0xb2   : > { %v380_v10 = vpop.permute.xlu1 %379 }
  0xb3   : > { %v406_v61 = vmul.f32 %v1122_v45, %v380_v10  ;;  %v407_v62 = vmul.f32 %v1124_v46, %v380_v10 }
  0xb5   : > { %v414_v44 = vadd.f32 %v406_v61, %v364_v5  ;;  %v415_v45 = vadd.f32 %v407_v62, %v365_v43 }
  0xb7   : > { %v468_v29 = vpop.permute.xlu1 %467 }
  0xb8   : > { %v500_v30 = vmul.f32 %v1140_v63, %v468_v29  ;;  %v501_v31 = vmul.f32 %v1142_v0, %v468_v29 }
  0xba   : > { %v508_v35 = vadd.f32 %v500_v30, %v458_v23  ;;  %v509_v36 = vadd.f32 %v501_v31, %v459_v28 }
  0xbc   : > { %v426_v39 = vpop.permute.xlu1 %425  ;;  %v517_v40 = vmax.f32 %v509_v36, 0.0  ;;  %v516_v42 = vmax.f32 %v508_v35, 0.0 }
  0xbd   : > { %v454_v51 = vmul.f32 %v1134_v59, %v426_v39  ;;  %v455_v52 = vmul.f32 %v1136_v60, %v426_v39 }
  0xbe   : > { %v827_v53 = vpack.c.bf16 %v519_v41, %v517_v40  ;;  %v829_v54 = vpack.c.bf16 %v518_v47, %v516_v42  ;;  %v626_v40 = vld [vmem:[%s1241_s5] sm:$0xff]  ;;  %v967_v41 = vmov 1966171168  }
  0xbf   : > { %v462_v1 = vadd.f32 %v454_v51, %v412_v55  ;;  %v463_v2 = vadd.f32 %v455_v52, %v413_v57  ;;  %v718_v42 = vunpack.c.l.s4 %v967_v41 }
  0xc0   : > { %v430_v25 = vpop.permute.xlu1 %429  ;;  %828 = vmatprep.subr.bf16.mxu0 %v827_v53 }
  0xc1   : > { %830 = vmatpush1.bf16.msra.mxu0 %v829_v54  ;;  %v456_v6 = vmul.f32 %v1134_v59, %v430_v25  ;;  %v457_v22 = vmul.f32 %v1136_v60, %v430_v25  ;;  %v512_v46 = vadd.f32 %v504_v3, %v462_v1  ;;  %v513_v7 = vadd.f32 %v505_v4, %v463_v2  ;;  %v524_v60 = vld [vmem:[%s1239_s3] sm:$0xff] }
  0xc2   : > { %v719_v48 = vunpack.c.0.s8 %v718_v42 }
  0xc3   : > { %v464_v9 = vadd.f32 %v456_v6, %v414_v44  ;;  %v465_v10 = vadd.f32 %v457_v22, %v415_v45  ;;  %v520_v16 = vmax.f32 %v512_v46, 0.0  ;;  %v521_v18 = vmax.f32 %v513_v7, 0.0 }
  0xc4   : > { %v722_v54 = vsub.s32 %v719_v48, %v1096_v24 }
  0xc5   : > { %v480_v8 = vpop.permute.xlu1 %479 }
  0xc6   : > { %v506_v11 = vmul.f32 %v1140_v63, %v480_v8  ;;  %v507_v12 = vmul.f32 %v1142_v0, %v480_v8  ;;  %v525_v63 = vld [vmem:[%s1239_s3 + $0x8] sm:$0xff]  ;;  %v531_v0 = vpop.permute.xlu0 %530 }
  0xc8   : > { %v514_v14 = vadd.f32 %v506_v11, %v464_v9  ;;  %v515_v15 = vadd.f32 %v507_v12, %v465_v10 }
  0xca   : > { %v522_v56 = vmax.f32 %v514_v14, 0.0  ;;  %v523_v19 = vmax.f32 %v515_v15, 0.0  ;;  %v536_v17 = vpop.permute.xlu1 %535 }
  0xcc   : > { %v831_v59 = vpack.c.bf16 %v523_v19, %v521_v18  ;;  %v833_v20 = vpack.c.bf16 %v522_v56, %v520_v16 }
  0xce   : > { %832 = vmatprep.subr.bf16.mxu0 %v831_v59  ;;  %v706_v47 = vpop.permute.xlu1 %705 }
  0xcf   : > { %834 = vmatpush1.bf16.msra.mxu0 %v833_v20  ;;  %v711_v50 = vrot.slane %v706_v47, %v1106_v27 }
  0xd2   : > { %818 = vmatmul.mubr.msk.f32.vlgmr.msra.gmra.mrb[0].mxu0 %vm538_vm0, %v524_v60 }
  0xd3   : > { %615 = vmatprep.mubr.f32.mxu0 %v966_v13 }
  0xd6   : > { %819 = vmatmul.mubr.msk.f32.gmra.mrb[2].mxu0 %vm538_vm0, %v525_v63 }
 0x1a5   : > { %v611_v23 = vpop.f32.mrb[0].mxu0 }
 0x1a6   : > { %v613_v28 = vpop.f32.mrb[1].mxu0  ;;  %v612_v29 = vadd.f32 %v611_v23, %v531_v0 }
 0x1a7   : > { %v614_v30 = vadd.f32 %v613_v28, %v531_v0 }
 0x1a8   : > { %v622_v35 = vmax.f32 %v612_v29, 0.0 }
 0x1a9   : > { %v617_v31 = vpop.f32.mrb[2].mxu0  ;;  %v623_v37 = vmax.f32 %v614_v30, 0.0 }
 0x1aa   : > { %v618_v33 = vadd.f32 %v617_v31, %v536_v17  ;;  %v619_v34 = vpop.f32.mrb[3].mxu0 }
 0x1ab   : > { %v620_v32 = vadd.f32 %v619_v34, %v536_v17 }
 0x1ac   : > { %v624_v36 = vmax.f32 %v618_v33, 0.0 }
 0x1ad   : > { %v625_v13 = vmax.f32 %v620_v32, 0.0 }
 0x1ae   : > { %v837_v38 = vpack.c.bf16 %v624_v36, %v622_v35 }
 0x1af   : > { %v835_v39 = vpack.c.bf16 %v625_v13, %v623_v37 }
 0x1b1   : > { %836 = vmatprep.subr.bf16.mxu1 %v835_v39 }
 0x1b2   : > { %838 = vmatpush1.bf16.msra.mxu1 %v837_v38 }
 0x1b5   : > { %820 = vmatmul.mubr.msk.f32.vlgmr.msra.gmra.mrb[0].mxu1 %vm627_vm1, %v626_v40 }
 0x288   : > { %v697_v51 = vpop.f32.mrb[0].mxu1 }
 0x289   : > { %v712_v52 = vadd.f32 %v711_v50, %v697_v51  ;;  %v699_v26 = vpop.f32.mrb[1].mxu1 }
 0x28a   : > { %v713_v53 = vadd.f32 %v711_v50, %v699_v26 }
 0x28c   : > { %v716_v55 = vcombine.low %v712_v52, %v713_v53 }
 0x28e   : > { %v723_v57 = vrot.slane %v716_v55, %v722_v54 }
 0x290   : > { %v730_v49 = vrot.slane %v723_v57, %v722_v54 }
 0x292   : > { %736 = vst.msk [vmem:[%s274_s18] sm:$0x3] %vm734_vm2, %v730_v49 }
 0x293   : > { %911 = shalt.err (!%p908_p3)
}
 0x294   : > { %s912_s9 = scalar_lea.hbm %s1194_s22, 32  ;;  %s916_s15 = scalar_lea.hbm %s1243_s7, 64 }
 0x295   : > { %p913_p4 = scmp.ne.s32.totalorder %s1194_s22, %s912_s9  ;;  %p917_p9 = scmp.lt.u32.totalorder %s1194_s22, %s1243_s7 }
 0x296   : > { %p918_p10 = scmp.lt.u32.totalorder %s916_s15, %s912_s9  ;;  %p920_p12 = scmp.lt.u32.totalorder %s912_s9, %s1194_s22 }
 0x297   : > { %p914_p7 = pnand %p913_p4, %p1050_p5 }
 0x298   : > { %p919_p11 = por %p918_p10, %p917_p9 }
 0x299   : > { %p915_p8 = pneg %p914_p7 }
 0x29a   : > { %p921_p13 = por %p920_p12, %p919_p11 }
 0x29c   : > { %p922_p0 = pnand %p921_p13, %p915_p8 }
 0x29e   : > { %925 = shalt.err (!%p922_p0)
}
 0x29f   : > { %839 = dma.vmem_to_hbm [thread:$0]  (%p1050_p5), %s1196_s19, 32, %s1194_s22, %s738_s23  }
 0x2a0 PF: > { %p845_p1 = scmp.ge.s32.totalorder %s960_s29, 2  ;;  %s764_s18 = sand.u32 1, %s948_s26  }
 0x2a1   : > { %s765_s20 = scalar_lea.sflag [#allocation4], %s764_s18 }
 0x2a2   : > { %p842_p2 = pnand %p845_p1, %p1054_p6 }
 0x2a4   : > { %943 = dma.done.wait (!%p842_p2), %s765_s20, 32  }
 0x2a5   : > { %945 = vsyncadd (!%p842_p2), %s765_s20, 4294967264  ;;  %p19_p3 = scmp.ge.s32.totalorder %s1037_s8, 4   ;;  %s1246_s26 = smov %s952_s27 }
 0x2a6   : > { %s1247_s27 = smov %s956_s28  ;;  %s1248_s28 = smov %s1048_s11 }
 0x2a7   : > { %s1249_s29 = smov %s1037_s8  ;;  %21 = sbr.rel (!%p19_p3) target bundleno = 6 (0x6), region = 83 }
 0x2ae   :  { %770 = vsyncpa [#allocation4], 1 }
 0x2af   :  { %772 = vsyncpa [#allocation4 + $0x1], 1 }

</bundles_post_ra>
